<compile_context>
chip_gen: v7x
topology: tpu7x:2x2x1
jax: 0.10.0
libtpu: 0.0.40
codegen_flags: <defaults>
</compile_context>

<pallas_src>
import jax
import jax.numpy as jnp
from jax.experimental import pallas as pl
from jax.experimental.pallas import tpu as pltpu

BN_EPS = 1e-5


def _round_up(a, b):
    return ((a + b - 1) // b) * b


def _stats_kernel(x_ref, w1_ref, o_ref):
    # h0 = x @ W1 (no bias: bias does not affect variance and is re-added to
    # the mean on the host side; zero-padded rows contribute nothing).
    h0 = jnp.dot(x_ref[...], w1_ref[...], preferred_element_type=jnp.float32)
    s = jnp.sum(h0, axis=0, keepdims=True)          # (1, inter)
    ss = jnp.sum(h0 * h0, axis=0, keepdims=True)    # (1, inter)
    o_ref[...] = jnp.concatenate([s, ss], axis=0)[None]


def _apply_kernel(x_ref, w1_ref, vecs_ref, b2_ref, o_ref):
    h0 = jnp.dot(x_ref[...], w1_ref[...], preferred_element_type=jnp.float32)
    vecs = vecs_ref[...]                  # (3, inter) f32
    scale = vecs[0:1, :]                  # gamma * rsqrt(var + eps)
    shift = vecs[1:2, :]                  # beta - mean0 * scale  (b1 folded in)
    w2row = vecs[2:3, :]                  # W2[:, 0]
    h = jnp.maximum(h0 * scale + shift, 0.0)
    # inter_num -> 1 projection as VPU multiply + lane-axis reduction; the
    # (TM,) result is written as a lane-dense (TM//128, 128) slab.
    out = jnp.sum(h * w2row, axis=1) + b2_ref[0]
    o_ref[...] = out.reshape(o_ref.shape).astype(o_ref.dtype)


def out_layer(x, params, *, tile_rows=1024):
    """x: (B, node_num, in_num) -> (B, node_num, 1)."""
    w1, b1, gamma, beta, w2, b2 = params
    del b1  # bias before BN cancels out of the normalized activations
    B, N, in_num = x.shape
    inter = w1.shape[1]
    M = B * N

    # Rows per tile: multiple of 1024 when tiling (so the (TM//128, 128)
    # output slab has a sublane-aligned block), capped so a double-buffered
    # x tile stays <= ~8 MiB (safe under every generation's scoped VMEM).
    bytes_per_row = max(in_num * jnp.dtype(x.dtype).itemsize, 1)
    vmem_cap_rows = max(1024, ((8 << 20) // bytes_per_row) // 1024 * 1024)
    tm = min(_round_up(tile_rows, 1024), vmem_cap_rows, _round_up(M, 128))
    mp = _round_up(M, tm)
    num_tiles = mp // tm

    x2 = x.reshape(M, in_num)
    if mp != M:
        x2 = jnp.pad(x2, ((0, mp - M), (0, 0)))   # zero rows: stats unaffected

    cparams = pltpu.CompilerParams(
        dimension_semantics=("parallel",),
        vmem_limit_bytes=32 * 1024 * 1024,
    )

    # ---- pass 1: per-tile partial sums of h0 and h0^2 -------------------
    partials = pl.pallas_call(
        _stats_kernel,
        out_shape=jax.ShapeDtypeStruct((num_tiles, 2, inter), jnp.float32),
        grid=(num_tiles,),
        in_specs=[
            pl.BlockSpec((tm, in_num), lambda i: (i, 0)),
            pl.BlockSpec((in_num, inter), lambda i: (0, 0)),
        ],
        out_specs=pl.BlockSpec((1, 2, inter), lambda i: (i, 0, 0)),
        compiler_params=cparams,
    )(x2, w1)

    # ---- tiny epilogue: fold BN (batch stats) + b1 into one FMA ---------
    totals = jnp.sum(partials, axis=0)                       # (2, inter)
    mean0 = totals[0] / M                                    # E[x @ W1]
    var = jnp.maximum(totals[1] / M - mean0 * mean0, 0.0)    # Var[h] == Var[h0]
    inv_std = jax.lax.rsqrt(var + BN_EPS)
    scale = gamma[0] * inv_std
    # (x@W1 + b1 - (mean0 + b1)) == x@W1 - mean0, so b1 folds away entirely.
    shift = beta[0] - mean0 * scale
    vecs = jnp.stack([scale, shift, w2[:, 0]], axis=0).astype(jnp.float32)
    b2s = jnp.asarray(b2, jnp.float32).reshape((1,))

    # ---- pass 2: recompute h0, BN+ReLU+projection, lane-dense output ----
    out = pl.pallas_call(
        _apply_kernel,
        out_shape=jax.ShapeDtypeStruct((mp // 128, 128), x.dtype),
        grid=(num_tiles,),
        in_specs=[
            pl.BlockSpec((tm, in_num), lambda i: (i, 0)),
            pl.BlockSpec((in_num, inter), lambda i: (0, 0)),
            pl.BlockSpec((3, inter), lambda i: (0, 0)),
            pl.BlockSpec(memory_space=pltpu.MemorySpace.SMEM),
        ],
        out_specs=pl.BlockSpec((tm // 128, 128), lambda i: (i, 0)),
        compiler_params=cparams,
    )(x2, w1, vecs, b2s)

    return out.reshape(mp)[:M].reshape(B, N, 1)


def init_params(key, in_num, inter_num):
    """Deterministic init mimicking PyTorch defaults (Linear: U(-k, k); BN: gamma=1, beta=0)."""
    k1, k2, k3, k4 = jax.random.split(key, 4)
    bound1 = 1.0 / (in_num ** 0.5)
    w1 = jax.random.uniform(k1, (in_num, inter_num), jnp.float32, -bound1, bound1)
    b1 = jax.random.uniform(k2, (1, inter_num), jnp.float32, -bound1, bound1)
    gamma = jnp.ones((1, inter_num), jnp.float32)
    beta = jnp.zeros((1, inter_num), jnp.float32)
    bound2 = 1.0 / (inter_num ** 0.5)
    w2 = jax.random.uniform(k3, (inter_num, 1), jnp.float32, -bound2, bound2)
    b2 = jax.random.uniform(k4, (1, 1), jnp.float32, -bound2, bound2)
    return (w1, b1, gamma, beta, w2, b2)


def out_layer_ref(x, params):
    """Pure-JAX reference of the PyTorch forward (layer_num=2, training-mode BN)."""
    w1, b1, gamma, beta, w2, b2 = params
    B, N, _ = x.shape
    h = x.reshape(B * N, -1) @ w1 + b1
    mean = jnp.mean(h, axis=0, keepdims=True)
    var = jnp.mean((h - mean) ** 2, axis=0, keepdims=True)
    h = (h - mean) / jnp.sqrt(var + BN_EPS) * gamma + beta
    h = jnp.maximum(h, 0.0)
    out = h @ w2 + b2
    return out.reshape(B, N, 1)


def _check(B, node_num, in_num, inter_num, seed):
    key = jax.random.PRNGKey(seed)
    kx, kp = jax.random.split(key)
    x = jax.random.normal(kx, (B, node_num, in_num), jnp.float32)
    params = init_params(kp, in_num, inter_num)

    y = jax.block_until_ready(jax.jit(out_layer)(x, params))
    y_ref = out_layer_ref(x, params)

    assert y.shape == (B, node_num, 1)
    err = float(jnp.max(jnp.abs(y - y_ref)))
    assert jnp.allclose(y, y_ref, atol=1e-4, rtol=1e-4), err


if __name__ == "__main__":
    # Small shapes consistent with the module: batch=2, node_num=4, in_num=32,
    # inter_num=128, layer_num=2 (single-tile path).
    _check(2, 4, 32, 128, seed=0)
    # Multi-tile path (M = 2048 rows -> two 1024-row tiles, "parallel" grid).
    _check(16, 128, 32, 128, seed=0)

    print("KERNEL_OK")
</pallas_src>

<mosaic_0001>
module attributes {stable_mosaic.version = 11 : i64} {
  func.func @_stats_kernel(%arg0: i32, %arg1: memref<128x32xf32, #tpu.memory_space<vmem>>, %arg2: memref<32x128xf32, #tpu.memory_space<vmem>>, %arg3: memref<1x2x128xf32, #tpu.memory_space<vmem>>) attributes {dimension_semantics = [#tpu.dimension_semantics<parallel>], iteration_bounds = array<i64: 1>, scalar_prefetch = 0 : i64, scratch_operands = 0 : i64, tpu.core_type = #tpu.core_type<tc>, window_params = [{transform_indices = @transform_0, window_bounds = array<i64: 128, 32>}, {pipeline_mode = #tpu.pipeline_mode<synchronous>, transform_indices = @transform_1, window_bounds = array<i64: 32, 128>}, {transform_indices = @transform_2, window_bounds = array<i64: 1, 2, 128>}]} {
    %c0 = arith.constant 0 : index
    %c0_0 = arith.constant 0 : index
    %0 = vector.load %arg1[%c0, %c0_0] : memref<128x32xf32, #tpu.memory_space<vmem>>, vector<128x32xf32>
    %c0_1 = arith.constant 0 : index
    %c0_2 = arith.constant 0 : index
    %1 = vector.load %arg2[%c0_1, %c0_2] : memref<32x128xf32, #tpu.memory_space<vmem>>, vector<32x128xf32>
    %cst = arith.constant dense<0.000000e+00> : vector<128x128xf32>
    %2 = tpu.matmul %0, %1, %cst {dimension_numbers = #tpu.dot_dimension_numbers<[1], [0], [0], [1], [0, 0, 1, 1], [], []>} : vector<128x32xf32>, vector<32x128xf32>, vector<128x128xf32> -> vector<128x128xf32>
    %cst_3 = arith.constant dense<0.000000e+00> : vector<128xf32>
    %3 = vector.multi_reduction <add>, %2, %cst_3 [0] : vector<128x128xf32> to vector<128xf32>
    %4 = vector.shape_cast %3 : vector<128xf32> to vector<1x128xf32>
    %5 = arith.mulf %2, %2 : vector<128x128xf32>
    %cst_4 = arith.constant dense<0.000000e+00> : vector<128xf32>
    %6 = vector.multi_reduction <add>, %5, %cst_4 [0] : vector<128x128xf32> to vector<128xf32>
    %7 = vector.shape_cast %6 : vector<128xf32> to vector<1x128xf32>
    %8 = tpu.concatenate %4, %7 in 0 : vector<1x128xf32>, vector<1x128xf32> -> vector<2x128xf32>
    %9 = vector.shape_cast %8 : vector<2x128xf32> to vector<1x2x128xf32>
    %c0_5 = arith.constant 0 : index
    %c0_6 = arith.constant 0 : index
    %c0_7 = arith.constant 0 : index
    %10 = vector.load %arg3[%c0_5, %c0_6, %c0_7] : memref<1x2x128xf32, #tpu.memory_space<vmem>>, vector<1x2x128xf32>
    tpu.vector_store %arg3[%c0_5, %c0_6, %c0_7], %9 {strides = array<i32>} : memref<1x2x128xf32, #tpu.memory_space<vmem>>, vector<1x2x128xf32>,
    return
  }
  func.func @transform_0(%arg0: i32) -> (i32, i32) {
    %c0_i32 = arith.constant 0 : i32
    %c0_i32_0 = arith.constant 0 : i32
    return %arg0, %c0_i32 : i32, i32
  }
  func.func @transform_1(%arg0: i32) -> (i32, i32) {
    %c0_i32 = arith.constant 0 : i32
    %c0_i32_0 = arith.constant 0 : i32
    %c0_i32_1 = arith.constant 0 : i32
    return %c0_i32, %c0_i32_0 : i32, i32
  }
  func.func @transform_2(%arg0: i32) -> (i32, i32, i32) {
    %c0_i32 = arith.constant 0 : i32
    %c0_i32_0 = arith.constant 0 : i32
    %c0_i32_1 = arith.constant 0 : i32
    return %arg0, %c0_i32, %c0_i32_0 : i32, i32, i32
  }
}

module attributes {stable_mosaic.version = 11 : i64} {
  func.func @_apply_kernel(%arg0: i32, %arg1: memref<128x32xf32, #tpu.memory_space<vmem>>, %arg2: memref<32x128xf32, #tpu.memory_space<vmem>>, %arg3: memref<3x128xf32, #tpu.memory_space<vmem>>, %arg4: memref<1xf32, #tpu.memory_space<smem>>, %arg5: memref<1x128xf32, #tpu.memory_space<vmem>>) attributes {dimension_semantics = [#tpu.dimension_semantics<parallel>], iteration_bounds = array<i64: 1>, scalar_prefetch = 0 : i64, scratch_operands = 0 : i64, tpu.core_type = #tpu.core_type<tc>, window_params = [{transform_indices = @transform_0, window_bounds = array<i64: 128, 32>}, {pipeline_mode = #tpu.pipeline_mode<synchronous>, transform_indices = @transform_1, window_bounds = array<i64: 32, 128>}, {pipeline_mode = #tpu.pipeline_mode<synchronous>, transform_indices = @transform_2, window_bounds = array<i64: 3, 128>}, {transform_indices = @transform_3, window_bounds = array<i64: 1>}, {transform_indices = @transform_4, window_bounds = array<i64: 1, 128>}]} {
    %c0 = arith.constant 0 : index
    %c0_0 = arith.constant 0 : index
    %0 = vector.load %arg1[%c0, %c0_0] : memref<128x32xf32, #tpu.memory_space<vmem>>, vector<128x32xf32>
    %c0_1 = arith.constant 0 : index
    %c0_2 = arith.constant 0 : index
    %1 = vector.load %arg2[%c0_1, %c0_2] : memref<32x128xf32, #tpu.memory_space<vmem>>, vector<32x128xf32>
    %cst = arith.constant dense<0.000000e+00> : vector<128x128xf32>
    %2 = tpu.matmul %0, %1, %cst {dimension_numbers = #tpu.dot_dimension_numbers<[1], [0], [0], [1], [0, 0, 1, 1], [], []>} : vector<128x32xf32>, vector<32x128xf32>, vector<128x128xf32> -> vector<128x128xf32>
    %c0_3 = arith.constant 0 : index
    %c0_4 = arith.constant 0 : index
    %3 = vector.load %arg3[%c0_3, %c0_4] : memref<3x128xf32, #tpu.memory_space<vmem>>, vector<3x128xf32>
    %4 = vector.extract_strided_slice %3 {offsets = [0, 0], sizes = [1, 128], strides = [1, 1]} : vector<3x128xf32> to vector<1x128xf32>
    %5 = vector.extract_strided_slice %3 {offsets = [1, 0], sizes = [1, 128], strides = [1, 1]} : vector<3x128xf32> to vector<1x128xf32>
    %6 = vector.extract_strided_slice %3 {offsets = [2, 0], sizes = [1, 128], strides = [1, 1]} : vector<3x128xf32> to vector<1x128xf32>
    %7 = vector.broadcast %4 : vector<1x128xf32> to vector<128x128xf32>
    %8 = arith.mulf %2, %7 : vector<128x128xf32>
    %9 = vector.broadcast %5 : vector<1x128xf32> to vector<128x128xf32>
    %10 = arith.addf %8, %9 : vector<128x128xf32>
    %cst_5 = arith.constant 0.000000e+00 : f32
    %11 = vector.broadcast %cst_5 : f32 to vector<128x128xf32>
    %12 = arith.maximumf %10, %11 : vector<128x128xf32>
    %13 = vector.broadcast %6 : vector<1x128xf32> to vector<128x128xf32>
    %14 = arith.mulf %12, %13 : vector<128x128xf32>
    %cst_6 = arith.constant dense<0.000000e+00> : vector<128xf32>
    %15 = vector.multi_reduction <add>, %14, %cst_6 [1] : vector<128x128xf32> to vector<128xf32>
    %c0_7 = arith.constant 0 : index
    %16 = memref.load %arg4[%c0_7] : memref<1xf32, #tpu.memory_space<smem>>
    %17 = vector.broadcast %16 : f32 to vector<128xf32>
    %18 = arith.addf %15, %17 : vector<128xf32>
    %19 = vector.shape_cast %18 : vector<128xf32> to vector<1x128xf32>
    %c0_8 = arith.constant 0 : index
    %c0_9 = arith.constant 0 : index
    %20 = vector.load %arg5[%c0_8, %c0_9] : memref<1x128xf32, #tpu.memory_space<vmem>>, vector<1x128xf32>
    tpu.vector_store %arg5[%c0_8, %c0_9], %19 {strides = array<i32>} : memref<1x128xf32, #tpu.memory_space<vmem>>, vector<1x128xf32>,
    return
  }
  func.func @transform_0(%arg0: i32) -> (i32, i32) {
    %c0_i32 = arith.constant 0 : i32
    %c0_i32_0 = arith.constant 0 : i32
    return %arg0, %c0_i32 : i32, i32
  }
  func.func @transform_1(%arg0: i32) -> (i32, i32) {
    %c0_i32 = arith.constant 0 : i32
    %c0_i32_0 = arith.constant 0 : i32
    %c0_i32_1 = arith.constant 0 : i32
    return %c0_i32, %c0_i32_0 : i32, i32
  }
  func.func @transform_2(%arg0: i32) -> (i32, i32) {
    %c0_i32 = arith.constant 0 : i32
    %c0_i32_0 = arith.constant 0 : i32
    %c0_i32_1 = arith.constant 0 : i32
    return %c0_i32, %c0_i32_0 : i32, i32
  }
  func.func @transform_3(%arg0: i32) -> i32 {
    %c0_i32 = arith.constant 0 : i32
    %c0_i32_0 = arith.constant 0 : i32
    return %c0_i32 : i32
  }
  func.func @transform_4(%arg0: i32) -> (i32, i32) {
    %c0_i32 = arith.constant 0 : i32
    %c0_i32_0 = arith.constant 0 : i32
    return %arg0, %c0_i32 : i32, i32
  }
}

</mosaic_0001>

<bundles_post_ra>
// kernel: out_layer.2
= control target key start
LH: loop header
LB: loop body
LE: loop exit
PB: predicated region body
PF: predicated region fallthrough
CT: control target
= control target key end

     0   :  { %vm31_vm0 = vcmask 261120   ;;  %vm283_vm1 = vcmask 1040384   ;;  %s464_s1 = inlined_call_operand.vmem [shape: f32[32,128], index: 1, kind: input, shape index: {}]   ;;  %s465_s0 = inlined_call_operand.vmem [shape: f32[128,32], index: 0, kind: input, shape index: {}]   ;;  %s466_s2 = inlined_call_operand.vmem [shape: f32[1,2,128], index: 2, kind: output, shape index: {}]  }
   0x1   :  { %v27_v0 = vld [vmem:[%s464_s1] sm:$0xff]  ;;  %v28_v1 = vld [vmem:[%s464_s1 + $0x8] sm:$0xff]  ;;  %v29_v2 = vld [vmem:[%s464_s1 + $0x10] sm:$0xff] }
   0x2   :  { %v358_v3 = vpack.c.bf16 %v28_v1, %v27_v0  ;;  %v30_v4 = vld [vmem:[%s464_s1 + $0x18] sm:$0xff]  ;;  %v11_v5 = vld [vmem:[%s465_s0] sm:$0xff]  ;;  %v12_v8 = vld [vmem:[%s465_s0 + $0x8] sm:$0xff] }
   0x3   :  { %v362_v6 = vpack.c.bf16 %v30_v4, %v29_v2  ;;  %334 = vmatprep.mubr.msk.f32.mxu0 %vm31_vm0, %v11_v5  ;;  %v19_v7 = vld [vmem:[%s465_s0 + $0x40] sm:$0xff]  ;;  %v20_v9 = vld [vmem:[%s465_s0 + $0x48] sm:$0xff]  ;;  %v13_v10 = vld [vmem:[%s465_s0 + $0x10] sm:$0xff] }
   0x4   :  { %359 = vmatprep.subr.bf16.mxu0 %v358_v3  ;;  %366 = vmatprep.subr.bf16.mxu1 %v358_v3  ;;  %v21_v11 = vld [vmem:[%s465_s0 + $0x50] sm:$0xff]  ;;  %v14_v12 = vld [vmem:[%s465_s0 + $0x18] sm:$0xff]  ;;  %v15_v14 = vld [vmem:[%s465_s0 + $0x20] sm:$0xff] }
   0x5   :  { %361 = vmatpush3.bf16.msra.mxu0 %v358_v3  ;;  %368 = vmatpush3.bf16.msra.mxu1 %v358_v3  ;;  %v22_v13 = vld [vmem:[%s465_s0 + $0x58] sm:$0xff]  ;;  %v23_v15 = vld [vmem:[%s465_s0 + $0x60] sm:$0xff]  ;;  %v16_v16 = vld [vmem:[%s465_s0 + $0x28] sm:$0xff] }
   0x6   :  { %363 = vmatprep.subr.bf16.mxu0 %v362_v6  ;;  %367 = vmatprep.subr.bf16.mxu1 %v362_v6  ;;  %v24_v17 = vld [vmem:[%s465_s0 + $0x68] sm:$0xff]  ;;  %v17_v18 = vld [vmem:[%s465_s0 + $0x30] sm:$0xff]  ;;  %v18_v20 = vld [vmem:[%s465_s0 + $0x38] sm:$0xff] }
   0x7   :  { %346 = vmatprep.mubr.msk.f32.mxu1 %vm31_vm0, %v19_v7  ;;  %v25_v19 = vld [vmem:[%s465_s0 + $0x70] sm:$0xff]  ;;  %v26_v21 = vld [vmem:[%s465_s0 + $0x78] sm:$0xff] }
   0x9   :  { %365 = vmatpush3.bf16.msra.mxu0 %v362_v6  ;;  %369 = vmatpush3.bf16.msra.mxu1 %v362_v6 }
   0xc   :  { %335 = vmatmul.mubr.msk.f32.vlgmr.msra.gmra.mrb[0].mxu0 %vm31_vm0, %v12_v8  ;;  %347 = vmatmul.mubr.msk.f32.vlgmr.msra.gmra.mrb[0].mxu1 %vm31_vm0, %v20_v9 }
   0xd   :  { %337 = vmatprep.mubr.msk.f32.mxu0 %vm31_vm0, %v13_v10  ;;  %349 = vmatprep.mubr.msk.f32.mxu1 %vm31_vm0, %v21_v11 }
  0x10   :  { %338 = vmatmul.mubr.msk.f32.gmra.mrb[2].mxu0 %vm31_vm0, %v14_v12  ;;  %350 = vmatmul.mubr.msk.f32.gmra.mrb[2].mxu1 %vm31_vm0, %v22_v13 }
  0x11   :  { %340 = vmatprep.mubr.msk.f32.mxu0 %vm31_vm0, %v15_v14  ;;  %352 = vmatprep.mubr.msk.f32.mxu1 %vm31_vm0, %v23_v15 }
  0x14   :  { %341 = vmatmul.mubr.msk.f32.gmra.mrb[4].mxu0 %vm31_vm0, %v16_v16  ;;  %353 = vmatmul.mubr.msk.f32.gmra.mrb[4].mxu1 %vm31_vm0, %v24_v17 }
  0x15   :  { %343 = vmatprep.mubr.msk.f32.mxu0 %vm31_vm0, %v17_v18  ;;  %355 = vmatprep.mubr.msk.f32.mxu1 %vm31_vm0, %v25_v19 }
  0x18   :  { %344 = vmatmul.mubr.msk.f32.gmra.mrb[6].mxu0 %vm31_vm0, %v18_v20  ;;  %356 = vmatmul.mubr.msk.f32.gmra.mrb[6].mxu1 %vm31_vm0, %v26_v21 }
  0xdf   :  { %v336_v22 = vpop.f32.mrb[0].mxu0  ;;  %v348_v23 = vpop.f32.mrb[0].mxu1 }
  0xe0   :  { %v247_v24 = vmul.f32 %v336_v22, %v336_v22  ;;  %v146_v25 = vpop.f32.mrb[1].mxu0  ;;  %v186_v26 = vpop.f32.mrb[1].mxu1  ;;  %v255_v62 = vmul.f32 %v348_v23, %v348_v23 }
  0xe1   :  { %v225_v27 = vadd.f32 %v336_v22, %v146_v25  ;;  %v246_v28 = vmul.f32 %v146_v25, %v146_v25  ;;  %v254_v59 = vmul.f32 %v186_v26, %v186_v26 }
  0xe3   :  { %v262_v29 = vadd.f32 %v247_v24, %v246_v28  ;;  %v339_v30 = vpop.f32.mrb[2].mxu0  ;;  %v351_v31 = vpop.f32.mrb[2].mxu1 }
  0xe4   :  { %v156_v32 = vpop.f32.mrb[3].mxu0  ;;  %v196_v33 = vpop.f32.mrb[3].mxu1  ;;  %v249_v36 = vmul.f32 %v339_v30, %v339_v30  ;;  %v257_v4 = vmul.f32 %v351_v31, %v351_v31 }
  0xe5   :  { %v226_v34 = vadd.f32 %v225_v27, %v156_v32  ;;  %v248_v35 = vmul.f32 %v156_v32, %v156_v32  ;;  %v256_v1 = vmul.f32 %v196_v33, %v196_v33 }
  0xe7   :  { %v263_v37 = vadd.f32 %v262_v29, %v248_v35  ;;  %v342_v38 = vpop.f32.mrb[4].mxu0  ;;  %v227_v39 = vadd.f32 %v339_v30, %v226_v34  ;;  %v354_v40 = vpop.f32.mrb[4].mxu1 }
  0xe8   :  { %v166_v41 = vpop.f32.mrb[5].mxu0  ;;  %v206_v42 = vpop.f32.mrb[5].mxu1  ;;  %v251_v46 = vmul.f32 %v342_v38, %v342_v38  ;;  %v259_v10 = vmul.f32 %v354_v40, %v354_v40 }
  0xe9   :  { %v228_v43 = vadd.f32 %v227_v39, %v166_v41  ;;  %v250_v44 = vmul.f32 %v166_v41, %v166_v41  ;;  %v264_v45 = vadd.f32 %v263_v37, %v249_v36  ;;  %v258_v7 = vmul.f32 %v206_v42, %v206_v42 }
  0xeb   :  { %v265_v47 = vadd.f32 %v264_v45, %v250_v44  ;;  %v345_v48 = vpop.f32.mrb[6].mxu0  ;;  %v229_v49 = vadd.f32 %v342_v38, %v228_v43  ;;  %v357_v50 = vpop.f32.mrb[6].mxu1 }
  0xec   :  { %v176_v51 = vpop.f32.mrb[7].mxu0  ;;  %v216_v52 = vpop.f32.mrb[7].mxu1  ;;  %v253_v56 = vmul.f32 %v345_v48, %v345_v48  ;;  %v261_v16 = vmul.f32 %v357_v50, %v357_v50 }
  0xed   :  { %v230_v53 = vadd.f32 %v229_v49, %v176_v51  ;;  %v252_v54 = vmul.f32 %v176_v51, %v176_v51  ;;  %v266_v55 = vadd.f32 %v265_v47, %v251_v46  ;;  %v260_v13 = vmul.f32 %v216_v52, %v216_v52 }
  0xef   :  { %v231_v57 = vadd.f32 %v345_v48, %v230_v53  ;;  %v267_v58 = vadd.f32 %v266_v55, %v252_v54 }
  0xf1   :  { %v268_v60 = vadd.f32 %v267_v58, %v253_v56  ;;  %v232_v61 = vadd.f32 %v231_v57, %v186_v26 }
  0xf3   :  { %v269_v63 = vadd.f32 %v268_v60, %v254_v59  ;;  %v233_v0 = vadd.f32 %v348_v23, %v232_v61 }
  0xf5   :  { %v234_v2 = vadd.f32 %v233_v0, %v196_v33  ;;  %v270_v3 = vadd.f32 %v269_v63, %v255_v62 }
  0xf7   :  { %v271_v5 = vadd.f32 %v270_v3, %v256_v1  ;;  %v235_v6 = vadd.f32 %v351_v31, %v234_v2 }
  0xf9   :  { %v236_v8 = vadd.f32 %v235_v6, %v206_v42  ;;  %v272_v9 = vadd.f32 %v271_v5, %v257_v4 }
  0xfb   :  { %v273_v11 = vadd.f32 %v272_v9, %v258_v7  ;;  %v237_v12 = vadd.f32 %v354_v40, %v236_v8 }
  0xfd   :  { %v238_v14 = vadd.f32 %v237_v12, %v216_v52  ;;  %v274_v15 = vadd.f32 %v273_v11, %v259_v10 }
  0xff   :  { %v239_v17 = vadd.f32 %v357_v50, %v238_v14  ;;  %v275_v18 = vadd.f32 %v274_v15, %v260_v13 }
 0x101   :  { %v240_v19 = vrot.slane %v239_v17, 4  ;;  %v276_v20 = vadd.f32 %v275_v18, %v261_v16 }
 0x103   :  { %v241_v21 = vadd.f32 %v240_v19, %v239_v17  ;;  %v277_v22 = vrot.slane %v276_v20, 4 }
 0x105   :  { %v242_v23 = vrot.slane %v241_v21, 2  ;;  %v278_v24 = vadd.f32 %v277_v22, %v276_v20 }
 0x107   :  { %v243_v25 = vadd.f32 %v242_v23, %v241_v21  ;;  %v279_v26 = vrot.slane %v278_v24, 2 }
 0x109   :  { %v244_v27 = vrot.slane %v243_v25, 1  ;;  %v280_v28 = vadd.f32 %v279_v26, %v278_v24 }
 0x10b   :  { %v281_v29 = vrot.slane %v280_v28, 1  ;;  %v245_v30 = vadd.f32 %v244_v27, %v243_v25 }
 0x10d   :  { %v282_v31 = vadd.f32 %v281_v29, %v280_v28 }
 0x10f   :  { %v284_v32 = vsel %vm283_vm1, %v245_v30, %v282_v31 }
 0x110   :  { %285 = vst [vmem:[%s466_s2] sm:$0x3] %v284_v32 }

// kernel: out_layer.3
= control target key start
LH: loop header
LB: loop body
LE: loop exit
PB: predicated region body
PF: predicated region fallthrough
CT: control target
= control target key end

     0   :  { %vm38_vm0 = vcmask 261120   ;;  %v233_v22 = vlaneseq  ;;  %vm386_vm1 = vcmask 130112   ;;  %vm393_vm2 = vcmask 195712   ;;  %s817_s1 = inlined_call_operand.vmem [shape: f32[32,128], index: 1, kind: input, shape index: {}]   ;;  %s818_s0 = inlined_call_operand.vmem [shape: f32[128,32], index: 0, kind: input, shape index: {}]   ;;  %s819_s2 = inlined_call_operand.vmem [shape: f32[3,128], index: 2, kind: input, shape index: {}]   ;;  %s820_s3 = inlined_call_operand.<no memory space> [shape: f32[1], index: 3, kind: input, shape index: {}]   ;;  %s821_s4 = inlined_call_operand.vmem [shape: f32[1,128], index: 4, kind: output, shape index: {}]  }
   0x1   :  { %v34_v0 = vld [vmem:[%s817_s1] sm:$0xff]  ;;  %v35_v1 = vld [vmem:[%s817_s1 + $0x8] sm:$0xff]  ;;  %v36_v2 = vld [vmem:[%s817_s1 + $0x10] sm:$0xff]  ;;  %vm400_vm3 = vcmask 261312   ;;  %vm407_vm4 = vcmask 326912   ;;  %vm414_vm5 = vcmask 392512  }
   0x2   :  { %v560_v3 = vpack.c.bf16 %v35_v1, %v34_v0  ;;  %v37_v4 = vld [vmem:[%s817_s1 + $0x18] sm:$0xff]  ;;  %v18_v5 = vld [vmem:[%s818_s0] sm:$0xff]  ;;  %v19_v8 = vld [vmem:[%s818_s0 + $0x8] sm:$0xff]  ;;  %v674_v23 = vshrl.u32 %v233_v22, 7  ;;  %vm421_vm6 = vcmask 458112   ;;  %vm428_vm7 = vcmask 523712  }
   0x3   :  { %v26_v6 = vld [vmem:[%s818_s0 + $0x40] sm:$0xff]  ;;  %v564_v7 = vpack.c.bf16 %v37_v4, %v36_v2  ;;  %536 = vmatprep.mubr.msk.f32.mxu0 %vm38_vm0, %v18_v5  ;;  %v27_v9 = vld [vmem:[%s818_s0 + $0x48] sm:$0xff]  ;;  %v20_v10 = vld [vmem:[%s818_s0 + $0x10] sm:$0xff]  ;;  %vm435_vm8 = vcmask 589312   ;;  %vm442_vm9 = vcmask 654912   ;;  %vm449_vm10 = vcmask 720512  }
   0x4   :  { %548 = vmatprep.mubr.msk.f32.mxu1 %vm38_vm0, %v26_v6  ;;  %561 = vmatprep.subr.bf16.mxu0 %v560_v3  ;;  %v28_v11 = vld [vmem:[%s818_s0 + $0x50] sm:$0xff]  ;;  %v21_v12 = vld [vmem:[%s818_s0 + $0x18] sm:$0xff]  ;;  %v22_v14 = vld [vmem:[%s818_s0 + $0x20] sm:$0xff]  ;;  %v235_v24 = vsub.s32 0, %v674_v23  ;;  %v255_v26 = vsub.s32 1, %v674_v23  ;;  %v291_v29 = vsub.s32 2, %v674_v23 }
   0x5   :  { %568 = vmatprep.subr.bf16.mxu1 %v560_v3  ;;  %563 = vmatpush3.bf16.msra.mxu0 %v560_v3  ;;  %v29_v13 = vld [vmem:[%s818_s0 + $0x58] sm:$0xff]  ;;  %v30_v15 = vld [vmem:[%s818_s0 + $0x60] sm:$0xff]  ;;  %v23_v16 = vld [vmem:[%s818_s0 + $0x28] sm:$0xff]  ;;  %vm456_vm11 = vcmask 786112   ;;  %vm463_vm12 = vcmask 851712   ;;  %vm470_vm13 = vcmask 917312  }
   0x6   :  { %570 = vmatpush3.bf16.msra.mxu1 %v560_v3  ;;  %565 = vmatprep.subr.bf16.mxu0 %v564_v7  ;;  %v31_v17 = vld [vmem:[%s818_s0 + $0x68] sm:$0xff]  ;;  %v24_v18 = vld [vmem:[%s818_s0 + $0x30] sm:$0xff]  ;;  %v25_v20 = vld [vmem:[%s818_s0 + $0x38] sm:$0xff]  ;;  %vm477_vm14 = vcmask 982912   ;;  %vm484_vm15 = vcmask 1048512  }
   0x7   :  { %569 = vmatprep.subr.bf16.mxu1 %v564_v7  ;;  %v32_v19 = vld [vmem:[%s818_s0 + $0x70] sm:$0xff]  ;;  %v33_v21 = vld [vmem:[%s818_s0 + $0x78] sm:$0xff]  ;;  %v232_v25 = vld [vmem:[%s819_s2] sm:$0x7] }
   0x8   :  { %v681_v27 = vrot.slane %v232_v25, %v235_v24  ;;  %v683_v28 = vrot.slane %v232_v25, %v255_v26  ;;  %v691_v39 = vrot.slane %v232_v25, %v291_v29 }
   0x9   :  { %567 = vmatpush3.bf16.msra.mxu0 %v564_v7 }
   0xa   :  { %571 = vmatpush3.bf16.msra.mxu1 %v564_v7 }
   0xc   :  { %537 = vmatmul.mubr.msk.f32.vlgmr.msra.gmra.mrb[0].mxu0 %vm38_vm0, %v19_v8 }
   0xd   :  { %549 = vmatmul.mubr.msk.f32.vlgmr.msra.gmra.mrb[0].mxu1 %vm38_vm0, %v27_v9  ;;  %539 = vmatprep.mubr.msk.f32.mxu0 %vm38_vm0, %v20_v10 }
   0xe   :  { %551 = vmatprep.mubr.msk.f32.mxu1 %vm38_vm0, %v28_v11 }
  0x10   :  { %540 = vmatmul.mubr.msk.f32.gmra.mrb[2].mxu0 %vm38_vm0, %v21_v12 }
  0x11   :  { %552 = vmatmul.mubr.msk.f32.gmra.mrb[2].mxu1 %vm38_vm0, %v29_v13  ;;  %542 = vmatprep.mubr.msk.f32.mxu0 %vm38_vm0, %v22_v14 }
  0x12   :  { %554 = vmatprep.mubr.msk.f32.mxu1 %vm38_vm0, %v30_v15 }
  0x14   :  { %543 = vmatmul.mubr.msk.f32.gmra.mrb[4].mxu0 %vm38_vm0, %v23_v16 }
  0x15   :  { %555 = vmatmul.mubr.msk.f32.gmra.mrb[4].mxu1 %vm38_vm0, %v31_v17  ;;  %545 = vmatprep.mubr.msk.f32.mxu0 %vm38_vm0, %v24_v18 }
  0x16   :  { %557 = vmatprep.mubr.msk.f32.mxu1 %vm38_vm0, %v32_v19 }
  0x18   :  { %546 = vmatmul.mubr.msk.f32.gmra.mrb[6].mxu0 %vm38_vm0, %v25_v20 }
  0x19   :  { %558 = vmatmul.mubr.msk.f32.gmra.mrb[6].mxu1 %vm38_vm0, %v33_v21 }
  0xdf   :  { %v538_v30 = vpop.f32.mrb[0].mxu0 }
  0xe0   :  { %v550_v31 = vpop.f32.mrb[0].mxu1  ;;  %v238_v32 = vmul.f32 %v538_v30, %v681_v27  ;;  %v153_v34 = vpop.f32.mrb[1].mxu0 }
  0xe1   :  { %v246_v33 = vmul.f32 %v550_v31, %v681_v27  ;;  %v193_v35 = vpop.f32.mrb[1].mxu1  ;;  %v237_v36 = vmul.f32 %v681_v27, %v153_v34 }
  0xe2   :  { %v245_v37 = vmul.f32 %v681_v27, %v193_v35  ;;  %v258_v40 = vadd.f32 %v683_v28, %v238_v32 }
  0xe3   :  { %v266_v38 = vadd.f32 %v683_v28, %v246_v33  ;;  %v257_v41 = vadd.f32 %v683_v28, %v237_v36  ;;  %v541_v42 = vpop.f32.mrb[2].mxu0 }
  0xe4   :  { %v553_v43 = vpop.f32.mrb[2].mxu1  ;;  %v240_v44 = vmul.f32 %v541_v42, %v681_v27  ;;  %v163_v45 = vpop.f32.mrb[3].mxu0  ;;  %v274_v49 = vmax.f32 %v258_v40, 0.0  ;;  %v265_v51 = vadd.f32 %v683_v28, %v245_v37 }
  0xe5   :  { %v248_v46 = vmul.f32 %v553_v43, %v681_v27  ;;  %v282_v47 = vmax.f32 %v266_v38, 0.0  ;;  %v203_v48 = vpop.f32.mrb[3].mxu1  ;;  %v273_v50 = vmax.f32 %v257_v41, 0.0  ;;  %v239_v52 = vmul.f32 %v681_v27, %v163_v45 }
  0xe6   :  { %v247_v53 = vmul.f32 %v681_v27, %v203_v48  ;;  %v260_v54 = vadd.f32 %v683_v28, %v240_v44  ;;  %v294_v57 = vmul.f32 %v691_v39, %v274_v49  ;;  %v281_v1 = vmax.f32 %v265_v51, 0.0 }
  0xe7   :  { %v268_v55 = vadd.f32 %v683_v28, %v248_v46  ;;  %v302_v56 = vmul.f32 %v691_v39, %v282_v47  ;;  %v544_v58 = vpop.f32.mrb[4].mxu0  ;;  %v259_v3 = vadd.f32 %v683_v28, %v239_v52  ;;  %v293_v5 = vmul.f32 %v691_v39, %v273_v50 }
  0xe8   :  { %v556_v59 = vpop.f32.mrb[4].mxu1  ;;  %v276_v60 = vmax.f32 %v260_v54, 0.0  ;;  %311 = vadd.xlane.f32.xlu0 %v294_v57  ;;  %v242_v62 = vmul.f32 %v544_v58, %v681_v27  ;;  %v173_v63 = vpop.f32.mrb[5].mxu0  ;;  %v267_v4 = vadd.f32 %v683_v28, %v247_v53  ;;  %v301_v18 = vmul.f32 %v691_v39, %v281_v1 }
  0xe9   :  { %v284_v61 = vmax.f32 %v268_v55, 0.0  ;;  %327 = vadd.xlane.f32.xlu1 %v302_v56  ;;  %v213_v0 = vpop.f32.mrb[5].mxu1  ;;  %v241_v2 = vmul.f32 %v681_v27, %v173_v63  ;;  %v275_v16 = vmax.f32 %v259_v3, 0.0  ;;  %v250_v19 = vmul.f32 %v556_v59, %v681_v27 }
  0xea   :  { %v296_v6 = vmul.f32 %v691_v39, %v276_v60  ;;  %v262_v7 = vadd.f32 %v683_v28, %v242_v62  ;;  %v283_v17 = vmax.f32 %v267_v4, 0.0  ;;  %v249_v20 = vmul.f32 %v681_v27, %v213_v0 }
  0xeb   :  { %v547_v8 = vpop.f32.mrb[6].mxu0  ;;  %v261_v10 = vadd.f32 %v683_v28, %v241_v2  ;;  %v304_v11 = vmul.f32 %v691_v39, %v284_v61  ;;  %v295_v30 = vmul.f32 %v691_v39, %v275_v16  ;;  %v270_v31 = vadd.f32 %v683_v28, %v250_v19 }
  0xec   :  { %v559_v9 = vpop.f32.mrb[6].mxu1  ;;  %309 = vadd.xlane.f32.xlu0 %v293_v5  ;;  %v244_v12 = vmul.f32 %v547_v8, %v681_v27  ;;  %v183_v13 = vpop.f32.mrb[7].mxu0  ;;  %v278_v21 = vmax.f32 %v262_v7, 0.0  ;;  %v303_v29 = vmul.f32 %v691_v39, %v283_v17  ;;  %v269_v32 = vadd.f32 %v683_v28, %v249_v20 }
  0xed   :  { %315 = vadd.xlane.f32.xlu1 %v296_v6  ;;  %v223_v14 = vpop.f32.mrb[7].mxu1  ;;  %v243_v15 = vmul.f32 %v681_v27, %v183_v13  ;;  %v277_v24 = vmax.f32 %v261_v10, 0.0  ;;  %v252_v33 = vmul.f32 %v559_v9, %v681_v27  ;;  %v286_v40 = vmax.f32 %v270_v31, 0.0 }
  0xee   :  { %v264_v25 = vadd.f32 %v683_v28, %v244_v12  ;;  %v251_v34 = vmul.f32 %v681_v27, %v223_v14  ;;  %v298_v37 = vmul.f32 %v691_v39, %v278_v21  ;;  %v285_v42 = vmax.f32 %v269_v32, 0.0 }
  0xef   :  { %v263_v26 = vadd.f32 %v683_v28, %v243_v15  ;;  %v297_v38 = vmul.f32 %v691_v39, %v277_v24  ;;  %v272_v41 = vadd.f32 %v683_v28, %v252_v33  ;;  %v306_v47 = vmul.f32 %v691_v39, %v286_v40 }
  0xf0   :  { %325 = vadd.xlane.f32.xlu0 %v301_v18  ;;  %v280_v35 = vmax.f32 %v264_v25, 0.0  ;;  %v271_v43 = vadd.f32 %v683_v28, %v251_v34  ;;  %v305_v48 = vmul.f32 %v691_v39, %v285_v42  ;;  %v739_v52 = vand.u32 127, %v233_v22 }
  0xf1   :  { %331 = vadd.xlane.f32.xlu1 %v304_v11  ;;  %v279_v36 = vmax.f32 %v263_v26, 0.0  ;;  %v288_v45 = vmax.f32 %v272_v41, 0.0  ;;  %v745_v56 = vstv %s820_s3 }
  0xf2   :  { %v300_v44 = vmul.f32 %v691_v39, %v280_v35  ;;  %v287_v46 = vmax.f32 %v271_v43, 0.0  ;;  %v381_v55 = vadd.s32 4294967288, %v739_v52  ;;  %v388_v57 = vadd.s32 4294967280, %v739_v52 }
  0xf3   :  { %v299_v27 = vmul.f32 %v691_v39, %v279_v36  ;;  %v308_v49 = vmul.f32 %v691_v39, %v288_v45  ;;  %v752_v22 = vadd.s32 4294967224, %v739_v52  ;;  %v395_v61 = vadd.s32 4294967272, %v739_v52 }
  0xf4   :  { %329 = vadd.xlane.f32.xlu0 %v303_v29  ;;  %v307_v50 = vmul.f32 %v691_v39, %v287_v46  ;;  %v379_v39 = vsub.s32 %v739_v52, %v674_v23  ;;  %v384_v62 = vsub.s32 %v381_v55, %v674_v23  ;;  %v758_v0 = vadd.s32 4294967232, %v739_v52 }
  0xf5   :  { %313 = vadd.xlane.f32.xlu1 %v295_v30  ;;  %v391_v1 = vsub.s32 %v388_v57, %v674_v23  ;;  %v402_v2 = vadd.s32 4294967264, %v739_v52  ;;  %v763_v4 = vadd.s32 4294967208, %v739_v52  ;;  %v766_v5 = vadd.s32 4294967216, %v739_v52 }
  0xf6   :  { %v409_v8 = vadd.s32 4294967256, %v739_v52  ;;  %v440_v9 = vsub.s32 %v752_v22, %v674_v23  ;;  %v398_v10 = vsub.s32 %v395_v61, %v674_v23  ;;  %v423_v14 = vadd.s32 4294967240, %v739_v52 }
  0xf7   :  { %v433_v15 = vsub.s32 %v758_v0, %v674_v23  ;;  %v405_v17 = vsub.s32 %v402_v2, %v674_v23  ;;  %v416_v18 = vadd.s32 4294967248, %v739_v52  ;;  %v454_v20 = vsub.s32 %v763_v4, %v674_v23 }
  0xf8   :  { %317 = vadd.xlane.f32.xlu0 %v297_v38  ;;  %v447_v21 = vsub.s32 %v766_v5, %v674_v23  ;;  %v412_v24 = vsub.s32 %v409_v8, %v674_v23  ;;  %v426_v33 = vsub.s32 %v423_v14, %v674_v23  ;;  %v465_v34 = vadd.s32 4294967192, %v739_v52 }
  0xf9   :  { %319 = vadd.xlane.f32.xlu1 %v298_v37  ;;  %v419_v36 = vsub.s32 %v416_v18, %v674_v23  ;;  %v458_v42 = vadd.s32 4294967200, %v739_v52 }
  0xfc   :  { %321 = vadd.xlane.f32.xlu0 %v299_v27 }
  0xfd   :  { %323 = vadd.xlane.f32.xlu1 %v300_v44 }
 0x100   :  { %333 = vadd.xlane.f32.xlu0 %v305_v48  ;;  %v479_v48 = vadd.s32 4294967176, %v739_v52 }
 0x101   :  { %335 = vadd.xlane.f32.xlu1 %v306_v47  ;;  %v468_v47 = vsub.s32 %v465_v34, %v674_v23 }
 0x102   :  { %v482_v0 = vsub.s32 %v479_v48, %v674_v23 }
 0x104   :  { %337 = vadd.xlane.f32.xlu0 %v307_v50 }
 0x105   :  { %339 = vadd.xlane.f32.xlu1 %v308_v49 }
 0x175   :  { %v312_v51 = vpop.xlane.xlu0 %311 }
 0x176   :  { %v736_v28 = vpop.xlane.xlu1 %327  ;;  %v344_v63 = vadd.f32 %v745_v56, %v312_v51 }
 0x177   :  { %v352_v46 = vadd.f32 %v745_v56, %v736_v28 }
 0x178   :  { %v385_v12 = vrot.slane %v344_v63, %v384_v62 }
 0x179   :  { %v310_v53 = vpop.xlane.xlu0 %309  ;;  %v441_v61 = vrot.slane %v352_v46, %v440_v9 }
 0x17a   :  { %v316_v54 = vpop.xlane.xlu1 %315  ;;  %v343_v58 = vadd.f32 %v745_v56, %v310_v53  ;;  %v472_v53 = vadd.s32 4294967184, %v739_v52 }
 0x17b   :  { %v346_v13 = vadd.f32 %v745_v56, %v316_v54 }
 0x17c   :  { %v380_v3 = vrot.slane %v343_v58, %v379_v39  ;;  %v461_v39 = vsub.s32 %v458_v42, %v674_v23 }
 0x17d   :  { %v326_v59 = vpop.xlane.xlu0 %325  ;;  %v399_v32 = vrot.slane %v346_v13, %v398_v10 }
 0x17e   :  { %v332_v60 = vpop.xlane.xlu1 %331  ;;  %v387_v19 = vsel %vm386_vm1, %v385_v12, %v380_v3  ;;  %v351_v43 = vadd.f32 %v745_v56, %v326_v59 }
 0x17f   :  { %v354_v54 = vadd.f32 %v745_v56, %v332_v60 }
 0x180   :  { %v434_v58 = vrot.slane %v351_v43, %v433_v15 }
 0x181   :  { %v330_v6 = vpop.xlane.xlu0 %329  ;;  %v455_v2 = vrot.slane %v354_v54, %v454_v20 }
 0x182   :  { %v314_v7 = vpop.xlane.xlu1 %313  ;;  %v353_v49 = vadd.f32 %v745_v56, %v330_v6 }
 0x183   :  { %v345_v11 = vadd.f32 %v745_v56, %v314_v7 }
 0x184   :  { %v448_v60 = vrot.slane %v353_v49, %v447_v21 }
 0x185   :  { %v392_v16 = vrot.slane %v345_v11, %v391_v1  ;;  %v318_v26 = vpop.xlane.xlu0 %317  ;;  %v475_v1 = vsub.s32 %v472_v53, %v674_v23 }
 0x186   :  { %v320_v25 = vpop.xlane.xlu1 %319  ;;  %v347_v31 = vadd.f32 %v745_v56, %v318_v26 }
 0x187   :  { %v394_v29 = vsel %vm393_vm2, %v392_v16, %v387_v19  ;;  %v348_v30 = vadd.f32 %v745_v56, %v320_v25 }
 0x188   :  { %v406_v35 = vrot.slane %v347_v31, %v405_v17  ;;  %v401_v38 = vsel %vm400_vm3, %v399_v32, %v394_v29 }
 0x189   :  { %v413_v37 = vrot.slane %v348_v30, %v412_v24  ;;  %v322_v41 = vpop.xlane.xlu0 %321 }
 0x18a   :  { %v324_v40 = vpop.xlane.xlu1 %323  ;;  %v408_v44 = vsel %vm407_vm4, %v406_v35, %v401_v38  ;;  %v349_v45 = vadd.f32 %v745_v56, %v322_v41 }
 0x18b   :  { %v350_v27 = vadd.f32 %v745_v56, %v324_v40  ;;  %v415_v55 = vsel %vm414_vm5, %v413_v37, %v408_v44 }
 0x18c   :  { %v420_v51 = vrot.slane %v349_v45, %v419_v36 }
 0x18d   :  { %v427_v50 = vrot.slane %v350_v27, %v426_v33  ;;  %v334_v28 = vpop.xlane.xlu0 %333 }
 0x18e   :  { %v336_v57 = vpop.xlane.xlu1 %335  ;;  %v422_v59 = vsel %vm421_vm6, %v420_v51, %v415_v55  ;;  %v355_v22 = vadd.f32 %v745_v56, %v334_v28 }
 0x18f   :  { %v429_v62 = vsel %vm428_vm7, %v427_v50, %v422_v59  ;;  %v356_v52 = vadd.f32 %v745_v56, %v336_v57 }
 0x190   :  { %v436_v63 = vsel %vm435_vm8, %v434_v58, %v429_v62  ;;  %v462_v7 = vrot.slane %v355_v22, %v461_v39 }
 0x191   :  { %v443_v3 = vsel %vm442_vm9, %v441_v61, %v436_v63  ;;  %v338_v5 = vpop.xlane.xlu0 %337  ;;  %v469_v10 = vrot.slane %v356_v52, %v468_v47 }
 0x192   :  { %v340_v4 = vpop.xlane.xlu1 %339  ;;  %v450_v6 = vsel %vm449_vm10, %v448_v60, %v443_v3  ;;  %v357_v9 = vadd.f32 %v745_v56, %v338_v5 }
 0x193   :  { %v358_v8 = vadd.f32 %v745_v56, %v340_v4  ;;  %v457_v11 = vsel %vm456_vm11, %v455_v2, %v450_v6 }
 0x194   :  { %v464_v12 = vsel %vm463_vm12, %v462_v7, %v457_v11  ;;  %v476_v13 = vrot.slane %v357_v9, %v475_v1 }
 0x195   :  { %v483_v23 = vrot.slane %v358_v8, %v482_v0  ;;  %v471_v14 = vsel %vm470_vm13, %v469_v10, %v464_v12 }
 0x196   :  { %v478_v15 = vsel %vm477_vm14, %v476_v13, %v471_v14 }
 0x197   :  { %v485_v16 = vsel %vm484_vm15, %v483_v23, %v478_v15 }
 0x198   :  { %487 = vst [vmem:[%s821_s4] sm:$0x1] %v485_v16 }

</bundles_post_ra>
